<compile_context>
chip_gen: v7x
topology: tpu7x:2x2x1
jax: 0.10.0
libtpu: 0.0.40
codegen_flags: <defaults>
</compile_context>

<pallas_src>
import functools

import jax
import jax.numpy as jnp
from jax.experimental import pallas as pl
from jax.experimental.pallas import tpu as pltpu


def _mexican_hat(t):
    t2 = t * t
    return (1.0 - t2) * jnp.exp(-0.5 * t2)


def _flex_wn_kernel(x_ref, params_ref, bias_ref, o_ref, *, mother_wavelet):
    """One grid step == one (batch, length-tile) block.

    x_ref      : (1, C, TL) VMEM
    params_ref : (4, H, C)  VMEM  -- stacked [w_wvl, w_trn, w_dil, w_lin], each (H, C)
    bias_ref   : (H, 1)     VMEM
    o_ref      : (1, H, TL) VMEM
    """
    x = x_ref[0]                        # (C, TL)
    w_wvl = params_ref[0]               # (H, C)
    w_trn = params_ref[1]               # (H, C)
    inv_dil = 1.0 / params_ref[2]       # (H, C) -- exact reciprocal, hoisted out
    w_lin_t = params_ref[3]             # (H, C)

    c_dim, tl = x.shape
    h = w_wvl.shape[0]

    # Linear term on the MXU: (H, C) @ (C, TL) -> (H, TL), f32 accumulate.
    lin = jnp.dot(
        w_lin_t, x,
        preferred_element_type=jnp.float32,
        precision=jax.lax.Precision.HIGHEST,
    )

    # Wavelet term: unrolled channel loop, single (H, TL) f32 accumulator.
    acc = jnp.zeros((h, tl), dtype=jnp.float32)
    for c in range(c_dim):                                      # C is static
        xc = x[c:c + 1, :]                                      # (1, TL)
        t = (xc - w_trn[:, c:c + 1]) * inv_dil[:, c:c + 1]      # (H, TL)
        acc = acc + w_wvl[:, c:c + 1] * mother_wavelet(t)

    o_ref[0] = (bias_ref[...] + acc + lin).astype(o_ref.dtype)


def _pick_length_tile(length):
    # Lane-dense tiles; fall back to the full axis (always layout-legal).
    for cand in (512, 256, 128):
        if length % cand == 0:
            return cand
    return length


def flex_multi_dim_wn(x, w_wvl, w_lin, w_trn, w_dil, bias,
                      mother_wavelet=_mexican_hat):
    """x: [BS, C, L] f32; params: [1, C, H, 1]; bias: [1, H, 1].
    Returns [BS, H, L] f32 (matches the PyTorch forward)."""
    bs, c, length = x.shape
    h = w_wvl.shape[2]

    # Glue: squeeze singleton dims, transpose to (H, C), stack into one operand.
    def to_hc(p):
        return p.reshape(c, h).T

    params = jnp.stack(
        [to_hc(w_wvl), to_hc(w_trn), to_hc(w_dil), to_hc(w_lin)], axis=0)
    bias2 = bias.reshape(h, 1)

    tl = _pick_length_tile(length)
    grid = (bs, length // tl)

    kernel = functools.partial(_flex_wn_kernel, mother_wavelet=mother_wavelet)

    return pl.pallas_call(
        kernel,
        out_shape=jax.ShapeDtypeStruct((bs, h, length), x.dtype),
        grid_spec=pltpu.PrefetchScalarGridSpec(
            num_scalar_prefetch=0,
            grid=grid,
            in_specs=[
                pl.BlockSpec((1, c, tl), lambda b, l: (b, 0, l)),   # x
                pl.BlockSpec((4, h, c), lambda b, l: (0, 0, 0)),    # stacked params
                pl.BlockSpec((h, 1), lambda b, l: (0, 0)),          # bias
            ],
            out_specs=pl.BlockSpec((1, h, tl), lambda b, l: (b, 0, l)),
        ),
        compiler_params=pltpu.CompilerParams(
            dimension_semantics=("parallel", "parallel"),
            vmem_limit_bytes=32 * 1024 * 1024,
        ),
    )(x, params, bias2)


def _reference(x, w_wvl, w_lin, w_trn, w_dil, bias):
    """Pure-JAX replica of the PyTorch forward for verification."""
    bs, c, length = x.shape
    h = w_wvl.shape[2]
    x_xp = jnp.broadcast_to(x[:, :, None, :], (bs, c, h, length))
    x_wvl = (x_xp - w_trn) / w_dil
    sum_hu = jnp.sum(w_wvl * _mexican_hat(x_wvl), axis=1)
    lin = jnp.sum(w_lin * x_xp, axis=1)
    return bias + sum_hu + lin


if __name__ == "__main__":
    BS, IN_CH, HID, LEN = 2, 4, 8, 128

    key = jax.random.PRNGKey(0)
    kx, kb, kw, kl, kt, kd = jax.random.split(key, 6)
    x = jax.random.normal(kx, (BS, IN_CH, LEN), dtype=jnp.float32)

    # Parameters in the FlexMultiDimWN layout [1, C, H, 1] / bias [1, H, 1].
    # Randomized (deterministically) around the module's init so the check
    # exercises real values; w_dil is kept away from zero like a trained layer.
    bias = 0.1 * jax.random.normal(kb, (1, HID, 1), dtype=jnp.float32)
    w_wvl = jax.random.normal(kw, (1, IN_CH, HID, 1), dtype=jnp.float32)
    w_lin = jax.random.normal(kl, (1, IN_CH, HID, 1), dtype=jnp.float32)
    w_trn = 0.5 * jax.random.normal(kt, (1, IN_CH, HID, 1), dtype=jnp.float32)
    w_dil = 0.5 + jnp.abs(
        jax.random.normal(kd, (1, IN_CH, HID, 1), dtype=jnp.float32))

    out = flex_multi_dim_wn(x, w_wvl, w_lin, w_trn, w_dil, bias)
    out = jax.block_until_ready(out)

    ref = _reference(x, w_wvl, w_lin, w_trn, w_dil, bias)
    assert out.shape == (BS, HID, LEN)
    assert jnp.allclose(out, ref, atol=2e-5, rtol=2e-5), (
        f"mismatch vs reference: max abs err {jnp.max(jnp.abs(out - ref)):.3e}")

    print("KERNEL_OK")
</pallas_src>

<mosaic_0001>
module attributes {stable_mosaic.version = 11 : i64} {
  func.func @_flex_wn_kernel(%arg0: i32, %arg1: i32, %arg2: memref<1x4x128xf32, #tpu.memory_space<vmem>>, %arg3: memref<4x8x4xf32, #tpu.memory_space<vmem>>, %arg4: memref<8x1xf32, #tpu.memory_space<vmem>>, %arg5: memref<1x8x128xf32, #tpu.memory_space<vmem>>) attributes {dimension_semantics = [#tpu.dimension_semantics<parallel>, #tpu.dimension_semantics<parallel>], iteration_bounds = array<i64: 2, 1>, scalar_prefetch = 0 : i64, scratch_operands = 0 : i64, tpu.core_type = #tpu.core_type<tc>, window_params = [{transform_indices = @transform_0, window_bounds = array<i64: 1, 4, 128>}, {pipeline_mode = #tpu.pipeline_mode<synchronous>, transform_indices = @transform_1, window_bounds = array<i64: 4, 8, 4>}, {pipeline_mode = #tpu.pipeline_mode<synchronous>, transform_indices = @transform_2, window_bounds = array<i64: 8, 1>}, {transform_indices = @transform_3, window_bounds = array<i64: 1, 8, 128>}]} {
    %c0 = arith.constant 0 : index
    %c0_0 = arith.constant 0 : index
    %c0_1 = arith.constant 0 : index
    %0 = vector.load %arg2[%c0, %c0_0, %c0_1] : memref<1x4x128xf32, #tpu.memory_space<vmem>>, vector<1x4x128xf32>
    %1 = vector.shape_cast %0 : vector<1x4x128xf32> to vector<4x128xf32>
    %c0_2 = arith.constant 0 : index
    %c0_3 = arith.constant 0 : index
    %c0_4 = arith.constant 0 : index
    %2 = vector.load %arg3[%c0_2, %c0_3, %c0_4] : memref<4x8x4xf32, #tpu.memory_space<vmem>>, vector<1x8x4xf32>
    %3 = vector.shape_cast %2 : vector<1x8x4xf32> to vector<8x4xf32>
    %c1 = arith.constant 1 : index
    %c0_5 = arith.constant 0 : index
    %c0_6 = arith.constant 0 : index
    %4 = vector.load %arg3[%c1, %c0_5, %c0_6] : memref<4x8x4xf32, #tpu.memory_space<vmem>>, vector<1x8x4xf32>
    %5 = vector.shape_cast %4 : vector<1x8x4xf32> to vector<8x4xf32>
    %c2 = arith.constant 2 : index
    %c0_7 = arith.constant 0 : index
    %c0_8 = arith.constant 0 : index
    %6 = vector.load %arg3[%c2, %c0_7, %c0_8] : memref<4x8x4xf32, #tpu.memory_space<vmem>>, vector<1x8x4xf32>
    %7 = vector.shape_cast %6 : vector<1x8x4xf32> to vector<8x4xf32>
    %cst = arith.constant 1.000000e+00 : f32
    %8 = vector.broadcast %cst : f32 to vector<8x4xf32>
    %9 = arith.divf %8, %7 : vector<8x4xf32>
    %c3 = arith.constant 3 : index
    %c0_9 = arith.constant 0 : index
    %c0_10 = arith.constant 0 : index
    %10 = vector.load %arg3[%c3, %c0_9, %c0_10] : memref<4x8x4xf32, #tpu.memory_space<vmem>>, vector<1x8x4xf32>
    %11 = vector.shape_cast %10 : vector<1x8x4xf32> to vector<8x4xf32>
    %cst_11 = arith.constant dense<0.000000e+00> : vector<8x128xf32>
    %12 = tpu.matmul %11, %1, %cst_11 {dimension_numbers = #tpu.dot_dimension_numbers<[1], [0], [0], [1], [0, 0, 1, 1], [], []>, precision = #tpu.contract_precision<fp32>} : vector<8x4xf32>, vector<4x128xf32>, vector<8x128xf32> -> vector<8x128xf32>
    %cst_12 = arith.constant 0.000000e+00 : f32
    %13 = vector.broadcast %cst_12 : f32 to vector<8x128xf32>
    %14 = vector.extract_strided_slice %1 {offsets = [0, 0], sizes = [1, 128], strides = [1, 1]} : vector<4x128xf32> to vector<1x128xf32>
    %15 = vector.extract_strided_slice %5 {offsets = [0, 0], sizes = [8, 1], strides = [1, 1]} : vector<8x4xf32> to vector<8x1xf32>
    %16 = vector.broadcast %14 : vector<1x128xf32> to vector<8x128xf32>
    %17 = vector.broadcast %15 : vector<8x1xf32> to vector<8x128xf32>
    %18 = arith.subf %16, %17 : vector<8x128xf32>
    %19 = vector.extract_strided_slice %9 {offsets = [0, 0], sizes = [8, 1], strides = [1, 1]} : vector<8x4xf32> to vector<8x1xf32>
    %20 = vector.broadcast %19 : vector<8x1xf32> to vector<8x128xf32>
    %21 = arith.mulf %18, %20 : vector<8x128xf32>
    %22 = vector.extract_strided_slice %3 {offsets = [0, 0], sizes = [8, 1], strides = [1, 1]} : vector<8x4xf32> to vector<8x1xf32>
    %23 = arith.mulf %21, %21 : vector<8x128xf32>
    %cst_13 = arith.constant 1.000000e+00 : f32
    %24 = vector.broadcast %cst_13 : f32 to vector<8x128xf32>
    %25 = arith.subf %24, %23 : vector<8x128xf32>
    %cst_14 = arith.constant -5.000000e-01 : f32
    %26 = vector.broadcast %cst_14 : f32 to vector<8x128xf32>
    %27 = arith.mulf %26, %23 : vector<8x128xf32>
    %28 = math.exp %27 : vector<8x128xf32>
    %29 = arith.mulf %25, %28 : vector<8x128xf32>
    %30 = vector.broadcast %22 : vector<8x1xf32> to vector<8x128xf32>
    %31 = arith.mulf %30, %29 : vector<8x128xf32>
    %32 = arith.addf %13, %31 : vector<8x128xf32>
    %33 = vector.extract_strided_slice %1 {offsets = [1, 0], sizes = [1, 128], strides = [1, 1]} : vector<4x128xf32> to vector<1x128xf32>
    %34 = vector.extract_strided_slice %5 {offsets = [0, 1], sizes = [8, 1], strides = [1, 1]} : vector<8x4xf32> to vector<8x1xf32>
    %35 = vector.broadcast %33 : vector<1x128xf32> to vector<8x128xf32>
    %36 = vector.broadcast %34 : vector<8x1xf32> to vector<8x128xf32>
    %37 = arith.subf %35, %36 : vector<8x128xf32>
    %38 = vector.extract_strided_slice %9 {offsets = [0, 1], sizes = [8, 1], strides = [1, 1]} : vector<8x4xf32> to vector<8x1xf32>
    %39 = vector.broadcast %38 : vector<8x1xf32> to vector<8x128xf32>
    %40 = arith.mulf %37, %39 : vector<8x128xf32>
    %41 = vector.extract_strided_slice %3 {offsets = [0, 1], sizes = [8, 1], strides = [1, 1]} : vector<8x4xf32> to vector<8x1xf32>
    %42 = arith.mulf %40, %40 : vector<8x128xf32>
    %cst_15 = arith.constant 1.000000e+00 : f32
    %43 = vector.broadcast %cst_15 : f32 to vector<8x128xf32>
    %44 = arith.subf %43, %42 : vector<8x128xf32>
    %cst_16 = arith.constant -5.000000e-01 : f32
    %45 = vector.broadcast %cst_16 : f32 to vector<8x128xf32>
    %46 = arith.mulf %45, %42 : vector<8x128xf32>
    %47 = math.exp %46 : vector<8x128xf32>
    %48 = arith.mulf %44, %47 : vector<8x128xf32>
    %49 = vector.broadcast %41 : vector<8x1xf32> to vector<8x128xf32>
    %50 = arith.mulf %49, %48 : vector<8x128xf32>
    %51 = arith.addf %32, %50 : vector<8x128xf32>
    %52 = vector.extract_strided_slice %1 {offsets = [2, 0], sizes = [1, 128], strides = [1, 1]} : vector<4x128xf32> to vector<1x128xf32>
    %53 = vector.extract_strided_slice %5 {offsets = [0, 2], sizes = [8, 1], strides = [1, 1]} : vector<8x4xf32> to vector<8x1xf32>
    %54 = vector.broadcast %52 : vector<1x128xf32> to vector<8x128xf32>
    %55 = vector.broadcast %53 : vector<8x1xf32> to vector<8x128xf32>
    %56 = arith.subf %54, %55 : vector<8x128xf32>
    %57 = vector.extract_strided_slice %9 {offsets = [0, 2], sizes = [8, 1], strides = [1, 1]} : vector<8x4xf32> to vector<8x1xf32>
    %58 = vector.broadcast %57 : vector<8x1xf32> to vector<8x128xf32>
    %59 = arith.mulf %56, %58 : vector<8x128xf32>
    %60 = vector.extract_strided_slice %3 {offsets = [0, 2], sizes = [8, 1], strides = [1, 1]} : vector<8x4xf32> to vector<8x1xf32>
    %61 = arith.mulf %59, %59 : vector<8x128xf32>
    %cst_17 = arith.constant 1.000000e+00 : f32
    %62 = vector.broadcast %cst_17 : f32 to vector<8x128xf32>
    %63 = arith.subf %62, %61 : vector<8x128xf32>
    %cst_18 = arith.constant -5.000000e-01 : f32
    %64 = vector.broadcast %cst_18 : f32 to vector<8x128xf32>
    %65 = arith.mulf %64, %61 : vector<8x128xf32>
    %66 = math.exp %65 : vector<8x128xf32>
    %67 = arith.mulf %63, %66 : vector<8x128xf32>
    %68 = vector.broadcast %60 : vector<8x1xf32> to vector<8x128xf32>
    %69 = arith.mulf %68, %67 : vector<8x128xf32>
    %70 = arith.addf %51, %69 : vector<8x128xf32>
    %71 = vector.extract_strided_slice %1 {offsets = [3, 0], sizes = [1, 128], strides = [1, 1]} : vector<4x128xf32> to vector<1x128xf32>
    %72 = vector.extract_strided_slice %5 {offsets = [0, 3], sizes = [8, 1], strides = [1, 1]} : vector<8x4xf32> to vector<8x1xf32>
    %73 = vector.broadcast %71 : vector<1x128xf32> to vector<8x128xf32>
    %74 = vector.broadcast %72 : vector<8x1xf32> to vector<8x128xf32>
    %75 = arith.subf %73, %74 : vector<8x128xf32>
    %76 = vector.extract_strided_slice %9 {offsets = [0, 3], sizes = [8, 1], strides = [1, 1]} : vector<8x4xf32> to vector<8x1xf32>
    %77 = vector.broadcast %76 : vector<8x1xf32> to vector<8x128xf32>
    %78 = arith.mulf %75, %77 : vector<8x128xf32>
    %79 = vector.extract_strided_slice %3 {offsets = [0, 3], sizes = [8, 1], strides = [1, 1]} : vector<8x4xf32> to vector<8x1xf32>
    %80 = arith.mulf %78, %78 : vector<8x128xf32>
    %cst_19 = arith.constant 1.000000e+00 : f32
    %81 = vector.broadcast %cst_19 : f32 to vector<8x128xf32>
    %82 = arith.subf %81, %80 : vector<8x128xf32>
    %cst_20 = arith.constant -5.000000e-01 : f32
    %83 = vector.broadcast %cst_20 : f32 to vector<8x128xf32>
    %84 = arith.mulf %83, %80 : vector<8x128xf32>
    %85 = math.exp %84 : vector<8x128xf32>
    %86 = arith.mulf %82, %85 : vector<8x128xf32>
    %87 = vector.broadcast %79 : vector<8x1xf32> to vector<8x128xf32>
    %88 = arith.mulf %87, %86 : vector<8x128xf32>
    %89 = arith.addf %70, %88 : vector<8x128xf32>
    %c0_21 = arith.constant 0 : index
    %c0_22 = arith.constant 0 : index
    %90 = vector.load %arg4[%c0_21, %c0_22] : memref<8x1xf32, #tpu.memory_space<vmem>>, vector<8x1xf32>
    %91 = vector.broadcast %90 : vector<8x1xf32> to vector<8x128xf32>
    %92 = arith.addf %91, %89 : vector<8x128xf32>
    %93 = arith.addf %92, %12 : vector<8x128xf32>
    %c0_23 = arith.constant 0 : index
    %c0_24 = arith.constant 0 : index
    %c0_25 = arith.constant 0 : index
    %94 = vector.load %arg5[%c0_23, %c0_24, %c0_25] : memref<1x8x128xf32, #tpu.memory_space<vmem>>, vector<1x8x128xf32>
    %95 = vector.shape_cast %94 : vector<1x8x128xf32> to vector<8x128xf32>
    %96 = vector.shape_cast %93 : vector<8x128xf32> to vector<1x8x128xf32>
    tpu.vector_store %arg5[%c0_23, %c0_24, %c0_25], %96 {strides = array<i32>} : memref<1x8x128xf32, #tpu.memory_space<vmem>>, vector<1x8x128xf32>,
    return
  }
  func.func @transform_0(%arg0: i32, %arg1: i32) -> (i32, i32, i32) {
    %c0_i32 = arith.constant 0 : i32
    %c0_i32_0 = arith.constant 0 : i32
    return %arg0, %c0_i32, %arg1 : i32, i32, i32
  }
  func.func @transform_1(%arg0: i32, %arg1: i32) -> (i32, i32, i32) {
    %c0_i32 = arith.constant 0 : i32
    %c0_i32_0 = arith.constant 0 : i32
    %c0_i32_1 = arith.constant 0 : i32
    %c0_i32_2 = arith.constant 0 : i32
    return %c0_i32, %c0_i32_0, %c0_i32_1 : i32, i32, i32
  }
  func.func @transform_2(%arg0: i32, %arg1: i32) -> (i32, i32) {
    %c0_i32 = arith.constant 0 : i32
    %c0_i32_0 = arith.constant 0 : i32
    %c0_i32_1 = arith.constant 0 : i32
    return %c0_i32, %c0_i32_0 : i32, i32
  }
  func.func @transform_3(%arg0: i32, %arg1: i32) -> (i32, i32, i32) {
    %c0_i32 = arith.constant 0 : i32
    %c0_i32_0 = arith.constant 0 : i32
    return %arg0, %c0_i32, %arg1 : i32, i32, i32
  }
}

</mosaic_0001>

<bundles_post_ra>
// kernel: tpu_custom_call.1
= control target key start
LH: loop header
LB: loop body
LE: loop exit
PB: predicated region body
PF: predicated region fallthrough
CT: control target
= control target key end

     0   :  { %8 = vsyncpa [#allocation3], 0  ;;  %s1256_s0 = inlined_call_operand.vmem [shape: f32[2,4,128], index: 0, kind: input, shape index: {}]   ;;  %s1257_s1 = inlined_call_operand.vmem [shape: f32[4,8,4], index: 1, kind: input, shape index: {}]   ;;  %s1258_s2 = inlined_call_operand.vmem [shape: f32[8,1], index: 2, kind: input, shape index: {}]   ;;  %s1259_s3 = inlined_call_operand.hbm [shape: f32[2,8,128], index: 3, kind: output, shape index: {}]  }
   0x1   :  { %10 = vsyncpa [#allocation3 + $0x1], 0  ;;  %s1104_s12 = smov 0   ;;  %s1106_s13 = smov 0  }
   0x2   :  { %s1108_s14 = smov 0   ;;  %s1110_s15 = smov 0  }
   0x3   :  { %s1112_s16 = smov 0   ;;  %s1114_s17 = smov 0  }
   0x4 LB: > { %s857_s18 = sadd.s32 4294967295, %s1075_s17   ;;  %s858_s19 = sadd.s32 4294967294, %s1075_s17   ;;  %s1075_s17 = sphi %s1114_s17, %s16_s17   ;;  %s1071_s16 = sphi %s1112_s16, %s1266_s16   ;;  %s1067_s15 = sphi %s1110_s15, %s1265_s15   ;;  %s1063_s14 = sphi %s1108_s14, %s1264_s14   ;;  %s1059_s13 = sphi %s1106_s13, %s1263_s13   ;;  %s1055_s12 = sphi %s1104_s12, %s1262_s12  }
   0x5   : > { %s28_s20 = sadd.s32 1, %s1071_s16  ;;  %s107_s21 = sadd.s32 1, %s1063_s14 }
   0x6   : > { %p30_p0 = scmp.ge.s32.totalorder %s28_s20, 2  ;;  %p117_p1 = scmp.ne.s32.totalorder %s1063_s14, %s1059_s13 }
   0x7   : > { %p118_p2 = scmp.eq.s32.totalorder %s857_s18, 1  ;;  %p123_p3 = scmp.ne.s32.totalorder %s1059_s13, %s1055_s12 }
   0x8   : > { %s1268_s20 = smov (%p30_p0, %s28_s20), 0  ;;  %p124_p5 = scmp.eq.s32.totalorder %s858_s19, 1 }
   0x9   : > { %p1144_p4 = por %p118_p2, %p117_p1  ;;  %s102_s23 = ssub.s32 %s1071_s16, %s1268_s20 }
   0xa   : > { %p861_p6 = scmp.ge.s32.totalorder %s1075_s17, 1  ;;  %p105_p7 = scmp.eq.s32.totalorder %s102_s23, 0 }
   0xb   : > { %p1151_p8 = por %p124_p5, %p123_p3  ;;  %p158_p9 = scmp.lt.s32.totalorder %s1075_s17, 3 }
   0xc   : > { %s1157_s25 = scalar_select %p105_p7, %s1063_s14, %s107_s21  }
   0xd   : > { %p159_p10 = pnand %p861_p6, %p158_p9 }
   0xe   : > { %p184_p11 = scmp.lt.s32.totalorder (!%p159_p10), %s1067_s15, 1  ;;  %v866_v0 = vld [vmem:[%s1257_s1 + $0x18] sm:$0xff] (!%p159_p10)  ;;  %vm201_vm0 = vcmask (!%p159_p10), 31744   ;;  %v1077_v1 = vmov (!%p159_p10), 0.0   ;;  %vm1078_vm1 = vmmov (!%p159_p10), 0   ;;  %v864_v3 = vld [vmem:[%s1257_s1 + $0x8] sm:$0xff] (!%p159_p10)  ;;  %v655_v24 = vlaneseq (!%p159_p10) }
   0xf   : > { %162 = sbr.rel (%p159_p10) target bundleno = 277 (0x115), region = 32  ;;  %883 = vmatprep.subr.mxu0 (!%p159_p10), %v1077_v1  ;;  %885 = vmatprep.mubr.msk.f32.mxu0 (!%p159_p10), %vm1078_vm1, %v1077_v1  ;;  %v203_v2 = vsel (!%p159_p10), %vm201_vm0, %v866_v0, 0  ;;  %v865_v4 = vld [vmem:[%s1257_s1 + $0x10] sm:$0xff] (!%p159_p10)  ;;  %v1079_v6 = vmov (!%p159_p10), 2   ;;  %v1080_v7 = vmov (!%p159_p10), 0   ;;  %vm205_vm2 = vcmask (!%p159_p10), 1043456  }
  0x10   : > { %v275_v5 = vand.u32 (!%p159_p10), 4294901760, %v203_v2  ;;  %888 = vmatprep.subr.mxu1 (!%p159_p10), %v1077_v1  ;;  %890 = vmatprep.mubr.msk.f32.mxu1 (!%p159_p10), %vm1078_vm1, %v1077_v1  ;;  %987 = vrcp.f32 (!%p159_p10), %v865_v4  ;;  %v1081_v14 = vmov (!%p159_p10), 1   ;;  %v192_v21 = vld [vmem:[%s1257_s1] sm:$0xff] (!%p159_p10)  ;;  %v1082_v22 = vmov (!%p159_p10), 3   ;;  %s181_s21 = sand.u32 (!%p159_p10), 1, %s1059_s13   ;;  %s868_s26 = sshll.u32 (!%p159_p10), %s1067_s15, 7 }
  0x11   : > { %976 = vset.pattern.permute.xlu1 (!%p159_p10), %v1079_v6  ;;  %974 = vset.pattern.permute.xlu0 (!%p159_p10), %v1080_v7  ;;  %v762_v23 = vld [vmem:[%s1258_s2] sm:$0xff] (!%p159_p10)  ;;  %v656_v26 = vshrl.u32 (!%p159_p10), %v655_v24, 7  ;;  %s862_s23 = sshll.u32 (!%p159_p10), %s181_s21, 3  ;;  %s1209_s4 = scalar_lea.hbm (!%p159_p10), %s1259_s3, %s868_s26 }
  0x12   : > { %v276_v8 = vsub.f32 (!%p159_p10), %v203_v2, %v275_v5  ;;  %715 = vperm.xlu1 (!%p159_p10), %976, %v864_v3   ;;  %661 = vperm.xlu0 (!%p159_p10), %974, %v864_v3   ;;  %s183_s27 = scalar_lea.vmem (!%p159_p10), [#allocation2], %s862_s23 }
  0x13   : > { %v657_v28 = vsub.s32 (!%p159_p10), 0, %v656_v26  ;;  %v686_v30 = vsub.s32 (!%p159_p10), 1, %v656_v26  ;;  %v712_v32 = vsub.s32 (!%p159_p10), 2, %v656_v26  ;;  %v738_v39 = vsub.s32 (!%p159_p10), 3, %v656_v26  ;;  %s786_s28 = sshll.u32 (!%p159_p10), %s183_s27, 4  ;;  %s1211_s28 = int_to_ptr.vmem [resolvable:$true] %s786_s28 }
  0x14   : > { %v277_v10 = vand.u32 (!%p159_p10), 4294901760, %v276_v8 }
  0x16   : > { %s185_s5 = scalar_select %p184_p11, %s1067_s15, 1  ;;  %v278_v13 = vsub.f32 %v276_v8, %v277_v10  ;;  %977 = vset.pattern.permute.xlu1 %v1080_v7  ;;  %975 = vset.pattern.permute.xlu0 %v1081_v14 }
  0x17   : > { %689 = vperm.xlu0 %975, %v864_v3   ;;  %s1083_s15 = smov [#allocation2]  }
  0x18   : > { %s863_s6 = sshll.u32 %s185_s5, 2  ;;  %v279_v15 = vand.u32 4294901760, %v278_v13  ;;  %s772_s5 = scalar_lea.sflag [#allocation3], %s181_s21 }
  0x19   : > { %s190_s9 = scalar_lea.vmem %s1256_s0, %s863_s6  ;;  %s997_s6 = scalar_lea.vmem %s1211_s28, 128 }
  0x1a   : > { %v1179_v9 = vld [vmem:[%s190_s9] sm:$0xf]  ;;  %v988_v17 = vpop.eup %987  ;;  %p998_p12 = scmp.ne.s32.totalorder %s1211_s28, %s997_s6  ;;  %s1001_s7 = sshll.u32 %s1083_s15, 4  ;;  %s1002_s7 = int_to_ptr.vmem [resolvable:$false] %s1001_s7 }
  0x1b   : > { %v207_v11 = vsel %vm205_vm2, %v1179_v9, 0  ;;  %667 = vperm.xlu1 %977, %v988_v17   ;;  %979 = vset.pattern.permute.xlu0 %v1079_v6  ;;  %v658_v31 = vrot.slane %v1179_v9, %v657_v28  ;;  %v687_v33 = vrot.slane %v1179_v9, %v686_v30  ;;  %v713_v37 = vrot.slane %v1179_v9, %v712_v32  ;;  %s1003_s8 = scalar_lea.vmem %s1002_s7, 256  ;;  %p1004_p1 = scmp.lt.s32.totalorder %s1211_s28, %s1002_s7 }
  0x1c   : > { %v210_v12 = vand.u32 4294901760, %v207_v11  ;;  %720 = vperm.xlu0 %979, %v988_v17   ;;  %v739_v44 = vrot.slane %v1179_v9, %v738_v39  ;;  %p999_p13 = pnand %p998_p12, %p1144_p4  ;;  %p1005_p2 = scmp.lt.s32.totalorder %s1003_s8, %s997_s6 }
  0x1e   : > { %884 = vmatpush3.msra.mxu0 %v210_v12  ;;  %v287_v16 = vsub.f32 %v207_v11, %v210_v12  ;;  %p1000_p0 = pneg %p999_p13  ;;  %p1006_p3 = por %p1005_p2, %p1004_p1 }
  0x1f   : > { %893 = vmatprep.subr.mxu0 %v1077_v1  ;;  %886 = vmatmul.mubr.f32.vlgmr.msra.gmra.mrb[0].mxu0 %v279_v15 }
  0x20   : > { %v288_v18 = vand.u32 4294901760, %v287_v16  ;;  %894 = vmatpush3.msra.mxu0 %v287_v16  ;;  %895 = vmatprep.mubr.msk.f32.mxu0 %vm1078_vm1, %v1077_v1  ;;  %p1007_p5 = pnand %p1006_p3, %p1000_p0 }
  0x21   : > { %903 = vmatprep.subr.mxu0 %v1077_v1  ;;  %978 = vset.pattern.permute.xlu1 %v1081_v14 }
  0x22   : > { %v289_v19 = vsub.f32 %v287_v16, %v288_v18  ;;  %694 = vperm.xlu1 %978, %v988_v17   ;;  %981 = vset.pattern.permute.xlu0 %v1080_v7 }
  0x23   : > { %896 = vmatmul.mubr.f32.vlgmr.msra.gmra.mrb[2].mxu0 %v276_v8  ;;  %679 = vperm.xlu0 %981, %v192_v21  }
  0x24   : > { %v290_v20 = vand.u32 4294901760, %v289_v19  ;;  %904 = vmatpush3.msra.mxu0 %v288_v18  ;;  %905 = vmatprep.mubr.msk.f32.mxu0 %vm1078_vm1, %v1077_v1 }
  0x26   : > { %889 = vmatpush3.msra.mxu1 %v290_v20  ;;  %980 = vset.pattern.permute.xlu1 %v1082_v22 }
  0x27   : > { %891 = vmatmul.mubr.f32.vlgmr.msra.gmra.mrb[0].mxu1 %v275_v5  ;;  %898 = vmatprep.subr.mxu1 %v1077_v1 }
  0x28   : > { %899 = vmatpush3.msra.mxu1 %v210_v12  ;;  %900 = vmatprep.mubr.msk.f32.mxu1 %vm1078_vm1, %v1077_v1 }
  0x29   : > { %908 = vmatprep.subr.mxu1 %v1077_v1  ;;  %906 = vmatmul.mubr.f32.vlgmr.msra.gmra.mrb[4].mxu0 %v275_v5 }
  0x2a   : > { %741 = vperm.xlu1 %980, %v864_v3   ;;  %984 = vset.pattern.permute.xlu0 %v1082_v22 }
  0x2b   : > { %901 = vmatmul.mubr.f32.vlgmr.msra.gmra.mrb[2].mxu1 %v277_v10  ;;  %757 = vperm.xlu0 %984, %v192_v21  }
  0x2c   : > { %909 = vmatpush3.msra.mxu1 %v210_v12  ;;  %910 = vmatprep.mubr.msk.f32.mxu1 %vm1078_vm1, %v1077_v1 }
  0x2e   : > { %746 = vperm.xlu1 %980, %v988_v17  }
  0x2f   : > { %911 = vmatmul.mubr.f32.vlgmr.msra.gmra.mrb[4].mxu1 %v275_v5  ;;  %986 = vset.pattern.permute.xlu0 %v1080_v7 }
  0x32   : > { %982 = vset.pattern.permute.xlu1 %v1081_v14 }
  0x33   : > { %705 = vperm.xlu1 %982, %v192_v21  }
  0x37   : > { %983 = vset.pattern.permute.xlu1 %v1079_v6 }
  0x38   : > { %731 = vperm.xlu1 %983, %v192_v21  }
  0x3c   : > { %985 = vset.pattern.permute.xlu1 %v1080_v7 }
  0x3d   : > { %765 = vperm.xlu1 %985, %v762_v23  }
  0x91   : > { %v716_v25 = vpop.permute.xlu1 %715  ;;  %v662_v29 = vpop.permute.xlu0 %661 }
  0x92   : > { %v664_v36 = vsub.f32 %v658_v31, %v662_v29  ;;  %v718_v42 = vsub.f32 %v713_v37, %v716_v25 }
  0x96   : > { %v690_v35 = vpop.permute.xlu0 %689 }
  0x97   : > { %v692_v38 = vsub.f32 %v687_v33, %v690_v35 }
  0x9a   : > { %v668_v27 = vpop.permute.xlu1 %667 }
  0x9b   : > { %v670_v40 = vmul.f32 %v668_v27, %v664_v36  ;;  %v721_v45 = vpop.permute.xlu0 %720 }
  0x9c   : > { %v723_v49 = vmul.f32 %v721_v45, %v718_v42 }
  0x9d   : > { %v671_v46 = vmul.f32 %v670_v40, %v670_v40 }
  0x9e   : > { %v724_v53 = vmul.f32 %v723_v49, %v723_v49 }
  0x9f   : > { %v673_v51 = vmul.f32 -0.5, %v671_v46  ;;  %v672_v0 = vsub.f32 1.0, %v671_v46 }
  0xa0   : > { %v726_v57 = vmul.f32 -0.5, %v724_v53  ;;  %v725_v3 = vsub.f32 1.0, %v724_v53 }
  0xa1   : > { %v695_v34 = vpop.permute.xlu1 %694  ;;  %v674_v55 = vmul.f32 1.442695, %v673_v51 }
  0xa2   : > { %v697_v43 = vmul.f32 %v695_v34, %v692_v38  ;;  %v727_v59 = vmul.f32 1.442695, %v726_v57  ;;  %v680_v7 = vpop.permute.xlu0 %679 }
  0xa3   : > { %989 = vpow2.f32 %v674_v55 }
  0xa4   : > { %v698_v47 = vmul.f32 %v697_v43, %v697_v43 }
  0xa6   : > { %v700_v52 = vmul.f32 -0.5, %v698_v47  ;;  %v699_v63 = vsub.f32 1.0, %v698_v47 }
  0xa8   : > { %v701_v56 = vmul.f32 1.442695, %v700_v52 }
  0xa9   : > { %v742_v41 = vpop.permute.xlu1 %741 }
  0xaa   : > { %v744_v48 = vsub.f32 %v739_v44, %v742_v41  ;;  %991 = vpow2.f32 %v701_v56  ;;  %v758_v20 = vpop.permute.xlu0 %757 }
  0xab   : > { %993 = vpow2.f32 %v727_v59 }
  0xad   : > { %v747_v50 = vpop.permute.xlu1 %746  ;;  %v990_v62 = vpop.eup %989 }
  0xae   : > { %v749_v54 = vmul.f32 %v747_v50, %v744_v48  ;;  %v676_v5 = vmul.f32 %v990_v62, %v672_v0 }
  0xb0   : > { %v750_v58 = vmul.f32 %v749_v54, %v749_v54  ;;  %v682_v10 = vmul.f32 %v680_v7, %v676_v5 }
  0xb2   : > { %v752_v60 = vmul.f32 -0.5, %v750_v58  ;;  %v706_v2 = vpop.permute.xlu1 %705  ;;  %v751_v8 = vsub.f32 1.0, %v750_v58 }
  0xb4   : > { %v753_v61 = vmul.f32 1.442695, %v752_v60  ;;  %v992_v1 = vpop.eup %991 }
  0xb5   : > { %v703_v4 = vmul.f32 %v992_v1, %v699_v63  ;;  %v994_v6 = vpop.eup %993 }
  0xb6   : > { %995 = vpow2.f32 %v753_v61  ;;  %v729_v11 = vmul.f32 %v994_v6, %v725_v3 }
  0xb7   : > { %v708_v9 = vmul.f32 %v706_v2, %v703_v4  ;;  %v732_v14 = vpop.permute.xlu1 %731 }
  0xb8   : > { %v734_v17 = vmul.f32 %v732_v14, %v729_v11 }
  0xb9   : > { %v709_v16 = vadd.f32 %v708_v9, %v682_v10 }
  0xbb   : > { %v735_v23 = vadd.f32 %v734_v17, %v709_v16 }
  0xbc   : > { %v766_v34 = vpop.permute.xlu1 %765 }
  0xc0   : > { %v996_v13 = vpop.eup %995 }
  0xc1   : > { %v755_v18 = vmul.f32 %v996_v13, %v751_v8 }
  0xc3   : > { %v760_v24 = vmul.f32 %v758_v20, %v755_v18 }
  0xc5   : > { %v761_v31 = vadd.f32 %v760_v24, %v735_v23 }
  0xc7   : > { %v768_v37 = vadd.f32 %v766_v34, %v761_v31 }
  0xf2   : > { %v281_v12 = vpop.f32.mrb[0].mxu0 }
  0xf3   : > { %v887_v15 = vpop.f32.mrb[1].mxu0 }
  0xf6   : > { %v431_v19 = vpop.f32.mrb[2].mxu0 }
  0xf7   : > { %v897_v21 = vpop.f32.mrb[3].mxu0 }
  0xfa   : > { %v357_v22 = vpop.f32.mrb[0].mxu1 }
  0xfb   : > { %v358_v25 = vadd.f32 %v357_v22, %v281_v12  ;;  %v892_v26 = vpop.f32.mrb[1].mxu1 }
  0xfc   : > { %v579_v27 = vpop.f32.mrb[4].mxu0 }
  0xfd   : > { %v432_v28 = vadd.f32 %v431_v19, %v358_v25  ;;  %v907_v29 = vpop.f32.mrb[5].mxu0 }
  0xfe   : > { %v505_v30 = vpop.f32.mrb[2].mxu1 }
  0xff   : > { %v506_v32 = vadd.f32 %v505_v30, %v432_v28  ;;  %v902_v33 = vpop.f32.mrb[3].mxu1 }
 0x101   : > { %v580_v35 = vadd.f32 %v579_v27, %v506_v32 }
 0x102   : > { %v651_v36 = vpop.f32.mrb[4].mxu1 }
 0x103   : > { %v652_v38 = vadd.f32 %v651_v36, %v580_v35  ;;  %v912_v39 = vpop.f32.mrb[5].mxu1 }
 0x105   : > { %v769_v40 = vadd.f32 %v768_v37, %v652_v38 }
 0x107   : > { %770 = vst [vmem:[%s183_s27] sm:$0xff] %v769_v40 }
 0x108   : > { %1010 = shalt.err (!%p1007_p5)
}
 0x109   : > { %s1011_s9 = scalar_lea.hbm %s1209_s4, 128  ;;  %s1015_s18 = scalar_lea.hbm %s1259_s3, 256 }
 0x10a   : > { %p1012_p6 = scmp.ne.s32.totalorder %s1209_s4, %s1011_s9  ;;  %p1016_p10 = scmp.lt.u32.totalorder %s1209_s4, %s1259_s3 }
 0x10b   : > { %p1017_p11 = scmp.lt.u32.totalorder %s1015_s18, %s1011_s9  ;;  %p1019_p13 = scmp.lt.u32.totalorder %s1011_s9, %s1209_s4 }
 0x10c   : > { %p1013_p7 = pnand %p1012_p6, %p1144_p4 }
 0x10d   : > { %p1018_p12 = por %p1017_p11, %p1016_p10 }
 0x10e   : > { %p1014_p9 = pneg %p1013_p7 }
 0x10f   : > { %p1020_p0 = por %p1019_p13, %p1018_p12 }
 0x111   : > { %p1021_p1 = pnand %p1020_p0, %p1014_p9 }
 0x113   : > { %1024 = shalt.err (!%p1021_p1)
}
 0x114   : > { %913 = dma.vmem_to_hbm [thread:$0]  (%p1144_p4), %s1211_s28, 128, %s1209_s4, %s772_s5  }
 0x115 PF: > { %p919_p2 = scmp.ge.s32.totalorder %s1075_s17, 2  ;;  %s798_s23 = sand.u32 1, %s1055_s12  }
 0x116   : > { %s799_s26 = scalar_lea.sflag [#allocation3], %s798_s23 }
 0x117   : > { %p916_p3 = pnand %p919_p2, %p1151_p8 }
 0x119   : > { %1050 = dma.done.wait (!%p916_p3), %s799_s26, 128  }
 0x11a   : > { %1052 = vsyncadd (!%p916_p3), %s799_s26, 4294967168  ;;  %s16_s17 = sadd.s32 1, %s1075_s17   ;;  %s1262_s12 = smov %s1059_s13 }
 0x11b   : > { %p13_p5 = scmp.ge.s32.totalorder %s16_s17, 4   ;;  %s1263_s13 = smov %s1063_s14 }
 0x11c   : > { %s1264_s14 = smov %s1157_s25  ;;  %s1265_s15 = smov %s1071_s16 }
 0x11d   : > { %s1266_s16 = smov %s1268_s20  ;;  %15 = sbr.rel (!%p13_p5) target bundleno = 4 (0x4), region = 70 }
 0x124   :  { %804 = vsyncpa [#allocation3], 1 }
 0x125   :  { %806 = vsyncpa [#allocation3 + $0x1], 1 }

</bundles_post_ra>
